<compile_context>
chip_gen: v7x
topology: tpu7x:2x2x1
jax: 0.10.0
libtpu: 0.0.40
codegen_flags: <defaults>
</compile_context>

<pallas_src>
import math

import jax
import jax.numpy as jnp
from jax.experimental import pallas as pl
from jax.experimental.pallas import tpu as pltpu


# ---------------------------------------------------------------------------
# Generation-aware scoped-VMEM limit (48 MiB on v7x's 64 MiB, 96 MiB on
# v5e/v6e's 128 MiB).  The 16/32 MiB defaults are too small for large tiles.
# ---------------------------------------------------------------------------
_VMEM_LIMIT = None


def _vmem_limit_bytes():
    global _VMEM_LIMIT
    if _VMEM_LIMIT is None:
        try:
            cap = pltpu.get_tpu_info().vmem_capacity_bytes
        except Exception:
            cap = 64 * 1024 * 1024
        _VMEM_LIMIT = int(min(cap * 3 // 4, 100 * 1024 * 1024))
    return _VMEM_LIMIT


# ---------------------------------------------------------------------------
# Tiling helpers
# ---------------------------------------------------------------------------
def _fit_tile(dim, target, granule):
    """Largest tile <= target that is a multiple of `granule` and divides dim;
    full dim if dim <= target or no divisor exists (full block is always legal)."""
    if dim <= target:
        return dim
    t = (target // granule) * granule
    while t >= granule:
        if dim % t == 0:
            return t
        t -= granule
    return dim


def _tile_and_pad(dim, target, granule):
    """Return (padded_dim, block) with block dividing padded_dim and
    block <= target whenever dim > target (prevents accidental huge blocks)."""
    if dim <= target:
        return dim, dim
    t = (target // granule) * granule
    while t >= granule:
        if dim % t == 0:
            return dim, t
        t -= granule
    block = (target // granule) * granule
    padded = -(-dim // block) * block
    return padded, block


# ---------------------------------------------------------------------------
# Kernel 1: fused multi-output linear projection
#   y_n = x @ w_n   for n weights sharing the same [K, N] shape
#   (x block loaded once per grid step; f32 accumulators; K-axis reduction)
# ---------------------------------------------------------------------------
def _make_fused_linear_kernel(n_w):
    def kernel(*refs):
        x_ref = refs[0]
        w_refs = refs[1:1 + n_w]
        o_refs = refs[1 + n_w:1 + 2 * n_w]
        acc_refs = refs[1 + 2 * n_w:]

        @pl.when(pl.program_id(2) == 0)
        def _init():
            for acc in acc_refs:
                acc[...] = jnp.zeros_like(acc)

        x = x_ref[...]
        for acc, w in zip(acc_refs, w_refs):
            acc[...] += jnp.dot(x, w[...], preferred_element_type=jnp.float32)

        @pl.when(pl.program_id(2) == pl.num_programs(2) - 1)
        def _store():
            for o, acc in zip(o_refs, acc_refs):
                o[...] = acc[...].astype(o.dtype)

    return kernel


def fused_linear(x, ws, *, out_dtype=None, tm=512, tn=512, tk=1024):
    """x: [M, K]; each w in ws: [K, N] (pre-transposed). Returns list of [M, N]."""
    M0, K0 = x.shape
    N0 = ws[0].shape[1]
    for w in ws:
        assert w.shape == (K0, N0)
    out_dtype = out_dtype if out_dtype is not None else x.dtype

    # dtype-aware M granule: bf16 packs 16 rows per sublane group.
    gm = 8 if x.dtype == jnp.float32 else (32 if x.dtype == jnp.int8 else 16)
    Mp, bm = _tile_and_pad(M0, tm, gm)
    Np, bn = _tile_and_pad(N0, tn, 128)
    Kp, bk = _tile_and_pad(K0, tk, 128)

    if Mp != M0 or Kp != K0:
        x = jnp.pad(x, ((0, Mp - M0), (0, Kp - K0)))
    if Kp != K0 or Np != N0:
        ws = [jnp.pad(w, ((0, Kp - K0), (0, Np - N0))) for w in ws]

    n_w = len(ws)
    grid = (Mp // bm, Np // bn, Kp // bk)

    outs = pl.pallas_call(
        _make_fused_linear_kernel(n_w),
        out_shape=tuple(jax.ShapeDtypeStruct((Mp, Np), out_dtype)
                        for _ in range(n_w)),
        grid_spec=pltpu.PrefetchScalarGridSpec(
            num_scalar_prefetch=0,
            grid=grid,
            in_specs=[pl.BlockSpec((bm, bk), lambda i, j, k: (i, k))]
                     + [pl.BlockSpec((bk, bn), lambda i, j, k: (k, j))
                        for _ in range(n_w)],
            out_specs=tuple(pl.BlockSpec((bm, bn), lambda i, j, k: (i, j))
                            for _ in range(n_w)),
            scratch_shapes=[pltpu.VMEM((bm, bn), jnp.float32)
                            for _ in range(n_w)],
        ),
        compiler_params=pltpu.CompilerParams(
            dimension_semantics=("parallel", "parallel", "arbitrary"),
            vmem_limit_bytes=_vmem_limit_bytes()),
    )(x, *ws)

    if not isinstance(outs, (tuple, list)):
        outs = (outs,)
    outs = list(outs)
    if Mp != M0 or Np != N0:
        outs = [o[:M0, :N0] for o in outs]
    return outs


def linear(x, w_t, **kw):
    return fused_linear(x, [w_t], **kw)[0]


# ---------------------------------------------------------------------------
# Kernel 2: flash-style attention, one (batch, head, q-block) per grid cell,
# online softmax over kv blocks.
#   q: [B, H, QL, DK]  k: [B, H, KL, DK]  v: [B, H, KL, DV]   (head-major)
#   ctx out: [B, H, QL, DV];  attn out (optional): [B, H, QL, KL]
# Masks arrive as additive f32 biases: kpm [B,1,KL], attn bias [QL,KL].
# ---------------------------------------------------------------------------
def _make_flash_kernel(has_kpm, has_bias, return_attn, approx_recip):
    def kernel(*refs):
        q_ref, k_ref, v_ref = refs[0], refs[1], refs[2]
        pos = 3
        kpm_ref = bias_ref = attn_ref = None
        if has_kpm:
            kpm_ref = refs[pos]; pos += 1
        if has_bias:
            bias_ref = refs[pos]; pos += 1
        o_ref = refs[pos]; pos += 1
        if return_attn:
            attn_ref = refs[pos]; pos += 1
        m_sc, l_sc, acc_sc = refs[pos], refs[pos + 1], refs[pos + 2]

        kv = pl.program_id(3)

        @pl.when(kv == 0)
        def _init():
            m_sc[...] = jnp.full_like(m_sc, -jnp.inf)
            l_sc[...] = jnp.zeros_like(l_sc)
            acc_sc[...] = jnp.zeros_like(acc_sc)

        q = q_ref[0, 0]                       # (bq, DK); 1/sqrt(d_k) pre-folded
        k = k_ref[0, 0]                       # (bkv, DK)

        # (bq, bkv) per-head scores on the MXU with f32 accumulation.
        s = jax.lax.dot_general(q, k, (((1,), (1,)), ((), ())),
                                preferred_element_type=jnp.float32)
        if has_bias:
            s = s + bias_ref[...]             # additive [bq, bkv] bias
        if has_kpm:
            s = s + kpm_ref[0]                # additive [1, bkv] bias

        m_prev = m_sc[...]
        m_new = jnp.maximum(m_prev, jnp.max(s, axis=-1, keepdims=True))
        alpha = jnp.exp(m_prev - m_new)
        p = jnp.exp(s - m_new)
        l_sc[...] = alpha * l_sc[...] + jnp.sum(p, axis=-1, keepdims=True)
        acc_sc[...] = alpha * acc_sc[...] + jnp.dot(
            p.astype(v_ref.dtype), v_ref[0, 0],
            preferred_element_type=jnp.float32)
        m_sc[...] = m_new

        @pl.when(kv == pl.num_programs(3) - 1)
        def _finalize():
            inv_l = pl.reciprocal(l_sc[...], approx=approx_recip)
            o_ref[0, 0] = (acc_sc[...] * inv_l).astype(o_ref.dtype)
            if return_attn:
                # return_attn forces a single kv block, so `p` covers the full
                # row and l_sc is already the full denominator.
                attn_ref[0, 0] = (p * inv_l).astype(attn_ref.dtype)

    return kernel


def attention_pallas(q, k, v, *, key_padding_mask=None, attn_mask=None,
                     return_attn=False, bq_target=256, bkv_target=512):
    """q: [B,H,QL,DK]  k: [B,H,KL,DK]  v: [B,H,KL,DV] (head-major).
    Returns (ctx [B,H,QL,DV], attn [B,H,QL,KL] or None)."""
    B, H, QL, DK = q.shape
    KL = k.shape[2]
    DV = v.shape[3]
    f32 = jnp.float32

    gq = 8 if q.dtype == jnp.float32 else 16
    bq = _fit_tile(QL, bq_target, gq)
    # bkv is the lane dim of the bias blocks -> multiple of 128 or full KL.
    bkv = KL if return_attn else _fit_tile(KL, bkv_target, 128)

    grid = (B, H, QL // bq, KL // bkv)

    in_specs = [
        pl.BlockSpec((1, 1, bq, DK), lambda b, h, qi, kv: (b, h, qi, 0)),
        pl.BlockSpec((1, 1, bkv, DK), lambda b, h, qi, kv: (b, h, kv, 0)),
        pl.BlockSpec((1, 1, bkv, DV), lambda b, h, qi, kv: (b, h, kv, 0)),
    ]
    args = [q, k, v]

    has_kpm = key_padding_mask is not None
    if has_kpm:
        kpm_bias = jnp.where(key_padding_mask.reshape(B, 1, KL) != 0,
                             -1e9, 0.0).astype(f32)
        in_specs.append(pl.BlockSpec((1, 1, bkv), lambda b, h, qi, kv: (b, 0, kv)))
        args.append(kpm_bias)

    has_bias = attn_mask is not None
    if has_bias:
        if jnp.issubdtype(attn_mask.dtype, jnp.floating):
            bias = attn_mask.astype(f32)
        else:
            bias = jnp.where(attn_mask != 0, -1e9, 0.0).astype(f32)
        in_specs.append(pl.BlockSpec((bq, bkv), lambda b, h, qi, kv: (qi, kv)))
        args.append(bias)

    out_shapes = [jax.ShapeDtypeStruct((B, H, QL, DV), q.dtype)]
    out_specs = [pl.BlockSpec((1, 1, bq, DV), lambda b, h, qi, kv: (b, h, qi, 0))]
    if return_attn:
        out_shapes.append(jax.ShapeDtypeStruct((B, H, QL, KL), q.dtype))
        out_specs.append(
            pl.BlockSpec((1, 1, bq, KL), lambda b, h, qi, kv: (b, h, qi, 0)))

    kernel = _make_flash_kernel(has_kpm, has_bias, return_attn,
                                approx_recip=(q.dtype != jnp.float32))

    outs = pl.pallas_call(
        kernel,
        out_shape=tuple(out_shapes),
        grid_spec=pltpu.PrefetchScalarGridSpec(
            num_scalar_prefetch=0,
            grid=grid,
            in_specs=in_specs,
            out_specs=tuple(out_specs),
            scratch_shapes=[pltpu.VMEM((bq, 1), f32),
                            pltpu.VMEM((bq, 1), f32),
                            pltpu.VMEM((bq, DV), f32)],
        ),
        compiler_params=pltpu.CompilerParams(
            dimension_semantics=("parallel", "parallel", "parallel",
                                 "arbitrary"),
            vmem_limit_bytes=_vmem_limit_bytes()),
    )(*args)

    if not isinstance(outs, (tuple, list)):
        outs = (outs,)
    ctx = outs[0]
    attn = outs[1] if return_attn else None
    return ctx, attn


# ---------------------------------------------------------------------------
# MultiHeadAttention forward (glue in plain JAX, hot paths in Pallas)
# ---------------------------------------------------------------------------
class MultiHeadAttentionPallas:
    def __init__(self, d_model, n_head, key, compute_dtype=jnp.bfloat16):
        self.d_model = d_model
        self.n_head = n_head
        self.d_k = d_model // n_head
        self.d_v = d_model // n_head
        self.compute_dtype = compute_dtype
        self.attn = None

        k1, k2, k3, k4 = jax.random.split(key, 4)
        bound = 1.0 / math.sqrt(d_model)

        # weights stored PRE-TRANSPOSED: [in_features, out_features]
        def w(k, shape):
            return jax.random.uniform(k, shape, jnp.float32,
                                      -bound, bound).astype(compute_dtype)

        self.Wq_t = w(k1, (d_model, self.d_k * n_head))
        self.Wk_t = w(k2, (d_model, self.d_k * n_head))
        self.Wv_t = w(k3, (d_model, self.d_v * n_head))
        self.Wo_t = w(k4, (self.d_v * n_head, d_model))
        # 1/sqrt(d_k) folded into the Q projection weight used by the kernels.
        self.Wq_scaled_t = (self.Wq_t.astype(jnp.float32)
                            / math.sqrt(self.d_k)).astype(compute_dtype)

    def __call__(self, query, key, value, attn_mask=None,
                 key_padding_mask=None, return_attn=False):
        B, q_len, _ = query.shape
        k_len = key.shape[1]
        cd = self.compute_dtype
        H, DK, DV = self.n_head, self.d_k, self.d_v

        qx = query.reshape(B * q_len, self.d_model).astype(cd)
        if (query is key) and (key is value):
            # Fused QKV: one pallas_call, three outputs (x loaded once, no
            # post-hoc HBM column-slice copies).
            Q, K, V = fused_linear(qx, [self.Wq_scaled_t, self.Wk_t, self.Wv_t])
        else:
            Q = linear(qx, self.Wq_scaled_t)
            kx = key.reshape(B * k_len, self.d_model).astype(cd)
            if key is value:
                K, V = fused_linear(kx, [self.Wk_t, self.Wv_t])
            else:
                vx = value.reshape(B * k_len, self.d_model).astype(cd)
                K = linear(kx, self.Wk_t)
                V = linear(vx, self.Wv_t)

        # Head-major [B, H, L, D] so the attention kernel sees clean per-head
        # 2-D MXU tiles (lane dim = D), selected purely via BlockSpec indexing.
        Qh = Q.reshape(B, q_len, H, DK).transpose(0, 2, 1, 3)
        Kh = K.reshape(B, k_len, H, DK).transpose(0, 2, 1, 3)
        Vh = V.reshape(B, k_len, H, DV).transpose(0, 2, 1, 3)

        ctx, attn = attention_pallas(Qh, Kh, Vh,
                                     key_padding_mask=key_padding_mask,
                                     attn_mask=attn_mask,
                                     return_attn=return_attn)
        self.attn = attn  # opt-in (None unless return_attn=True)

        ctx2 = ctx.transpose(0, 2, 1, 3).reshape(B * q_len, H * DV)
        out = linear(ctx2, self.Wo_t, out_dtype=jnp.float32)
        return out.reshape(B, q_len, self.d_model)


# ---------------------------------------------------------------------------
# Pure-JAX reference mirroring the PyTorch module semantics
# ---------------------------------------------------------------------------
def mha_reference(mha, query, key, value, attn_mask=None,
                  key_padding_mask=None):
    f32 = jnp.float32
    B, q_len, d_model = query.shape
    k_len = key.shape[1]
    n_head, d_k, d_v = mha.n_head, mha.d_k, mha.d_v

    def proj(x, w_t):
        return (x.reshape(-1, d_model).astype(f32) @ w_t.astype(f32))

    Q = proj(query, mha.Wq_t).reshape(B, q_len, n_head, d_k).transpose(0, 2, 1, 3)
    K = proj(key, mha.Wk_t).reshape(B, k_len, n_head, d_k).transpose(0, 2, 1, 3)
    V = proj(value, mha.Wv_t).reshape(B, k_len, n_head, d_v).transpose(0, 2, 1, 3)

    dot = jnp.einsum("bhqd,bhkd->bhqk", Q, K) / math.sqrt(d_k)
    mask = jnp.zeros((B, 1, q_len, k_len), f32)
    if key_padding_mask is not None:
        mask = jnp.maximum(
            mask, (key_padding_mask != 0).astype(f32)[:, None, None, :])
    if attn_mask is not None:
        if jnp.issubdtype(attn_mask.dtype, jnp.floating):
            dot = dot + attn_mask.astype(f32)[None, None, :, :]
        else:
            mask = jnp.maximum(
                mask, (attn_mask != 0).astype(f32)[None, None, :, :])
    dot = jnp.where(mask != 0, -1000000000.0, dot)
    attn = jax.nn.softmax(dot, axis=-1)
    ctx = jnp.einsum("bhqk,bhkd->bhqd", attn, V)
    ctx = ctx.transpose(0, 2, 1, 3).reshape(B, q_len, n_head * d_v)
    out = ctx @ mha.Wo_t.astype(f32)
    return out, attn


# ---------------------------------------------------------------------------
if __name__ == "__main__":
    B, L, d_model, n_head = 2, 8, 32, 4
    root = jax.random.PRNGKey(0)
    kq, kk, kv, kw = jax.random.split(root, 4)
    query = jax.random.normal(kq, (B, L, d_model), jnp.float32)
    key_t = jax.random.normal(kk, (B, L, d_model), jnp.float32)
    value = jax.random.normal(kv, (B, L, d_model), jnp.float32)

    # --- f32 path: tight correctness checks ---------------------------------
    mha_f32 = MultiHeadAttentionPallas(d_model, n_head, kw,
                                       compute_dtype=jnp.float32)

    # 1) no masks
    out = jax.block_until_ready(mha_f32(query, key_t, value))
    ref, _ = mha_reference(mha_f32, query, key_t, value)
    assert jnp.allclose(out, ref, atol=2e-4, rtol=2e-4), "mismatch (no mask)"

    # 2) bool attn_mask (causal) + key_padding_mask, attn probs requested
    causal = jnp.triu(jnp.ones((L, L), jnp.int32), k=1)
    kpad = jnp.zeros((B, L), jnp.int32).at[:, -2:].set(1)
    out_m = jax.block_until_ready(
        mha_f32(query, key_t, value, attn_mask=causal,
                key_padding_mask=kpad, return_attn=True))
    ref_m, ref_attn = mha_reference(mha_f32, query, key_t, value,
                                    attn_mask=causal, key_padding_mask=kpad)
    assert jnp.allclose(out_m, ref_m, atol=2e-4, rtol=2e-4), "mismatch (masked)"
    assert jnp.allclose(mha_f32.attn, ref_attn, atol=2e-4, rtol=2e-4), \
        "mismatch (attn probs)"

    # 3) float attn_mask (additive bias)
    bias = 0.1 * jax.random.normal(jax.random.PRNGKey(1), (L, L), jnp.float32)
    out_b = jax.block_until_ready(mha_f32(query, key_t, value, attn_mask=bias))
    ref_b, _ = mha_reference(mha_f32, query, key_t, value, attn_mask=bias)
    assert jnp.allclose(out_b, ref_b, atol=2e-4, rtol=2e-4), "mismatch (bias)"

    # 4) key is value (exercises the fused-KV projection)
    out_kv = jax.block_until_ready(mha_f32(query, key_t, key_t))
    ref_kv, _ = mha_reference(mha_f32, query, key_t, key_t)
    assert jnp.allclose(out_kv, ref_kv, atol=2e-4, rtol=2e-4), "mismatch (kv)"

    # --- bf16 path (default): self-attention exercises the fused-QKV matmul --
    mha_bf16 = MultiHeadAttentionPallas(d_model, n_head, kw,
                                        compute_dtype=jnp.bfloat16)
    out2 = jax.block_until_ready(mha_bf16(query, query, query))
    ref2, _ = mha_reference(mha_bf16, query, query, query)
    assert jnp.allclose(out2, ref2, atol=5e-2, rtol=5e-2), "mismatch (bf16)"

    print("KERNEL_OK")
</pallas_src>

<mosaic_0001>
module attributes {stable_mosaic.version = 11 : i64} {
  func.func @kernel(%arg0: i32, %arg1: i32, %arg2: i32, %arg3: memref<16x32xf32, #tpu.memory_space<vmem>>, %arg4: memref<32x32xf32, #tpu.memory_space<vmem>>, %arg5: memref<16x32xf32, #tpu.memory_space<vmem>>, %arg6: memref<16x32xf32, #tpu.memory_space<vmem>>) attributes {dimension_semantics = [#tpu.dimension_semantics<parallel>, #tpu.dimension_semantics<parallel>, #tpu.dimension_semantics<arbitrary>], iteration_bounds = array<i64: 1, 1, 1>, scalar_prefetch = 0 : i64, scratch_operands = 1 : i64, tpu.core_type = #tpu.core_type<tc>, window_params = [{transform_indices = @transform_0, window_bounds = array<i64: 16, 32>}, {transform_indices = @transform_1, window_bounds = array<i64: 32, 32>}, {transform_indices = @transform_2, window_bounds = array<i64: 16, 32>}]} {
    %c0_i32 = arith.constant 0 : i32
    %0 = arith.cmpi eq, %arg2, %c0_i32 : i32
    %1 = arith.extui %0 : i1 to i32
    %c0_i32_0 = arith.constant 0 : i32
    %2 = arith.cmpi ne, %1, %c0_i32_0 : i32
    scf.if %2 {
      %cst_10 = arith.constant 0.000000e+00 : f32
      %12 = vector.broadcast %cst_10 : f32 to vector<16x32xf32>
      %c0_11 = arith.constant 0 : index
      %c0_12 = arith.constant 0 : index
      %13 = vector.load %arg6[%c0_11, %c0_12] : memref<16x32xf32, #tpu.memory_space<vmem>>, vector<16x32xf32>
      tpu.vector_store %arg6[%c0_11, %c0_12], %12 {strides = array<i32>} : memref<16x32xf32, #tpu.memory_space<vmem>>, vector<16x32xf32>,
    } else {
    }
    %c0 = arith.constant 0 : index
    %c0_1 = arith.constant 0 : index
    %3 = vector.load %arg3[%c0, %c0_1] : memref<16x32xf32, #tpu.memory_space<vmem>>, vector<16x32xf32>
    %c0_2 = arith.constant 0 : index
    %c0_3 = arith.constant 0 : index
    %4 = vector.load %arg6[%c0_2, %c0_3] : memref<16x32xf32, #tpu.memory_space<vmem>>, vector<16x32xf32>
    %c0_4 = arith.constant 0 : index
    %c0_5 = arith.constant 0 : index
    %5 = vector.load %arg4[%c0_4, %c0_5] : memref<32x32xf32, #tpu.memory_space<vmem>>, vector<32x32xf32>
    %cst = arith.constant dense<0.000000e+00> : vector<16x32xf32>
    %6 = tpu.matmul %3, %5, %cst {dimension_numbers = #tpu.dot_dimension_numbers<[1], [0], [0], [1], [0, 0, 1, 1], [], []>} : vector<16x32xf32>, vector<32x32xf32>, vector<16x32xf32> -> vector<16x32xf32>
    %7 = arith.addf %4, %6 : vector<16x32xf32>
    %c0_6 = arith.constant 0 : index
    %c0_7 = arith.constant 0 : index
    %8 = vector.load %arg6[%c0_6, %c0_7] : memref<16x32xf32, #tpu.memory_space<vmem>>, vector<16x32xf32>
    tpu.vector_store %arg6[%c0_6, %c0_7], %7 {strides = array<i32>} : memref<16x32xf32, #tpu.memory_space<vmem>>, vector<16x32xf32>,
    %c0_i32_8 = arith.constant 0 : i32
    %9 = arith.cmpi eq, %arg2, %c0_i32_8 : i32
    %10 = arith.extui %9 : i1 to i32
    %c0_i32_9 = arith.constant 0 : i32
    %11 = arith.cmpi ne, %10, %c0_i32_9 : i32
    scf.if %11 {
      %c0_10 = arith.constant 0 : index
      %c0_11 = arith.constant 0 : index
      %12 = vector.load %arg6[%c0_10, %c0_11] : memref<16x32xf32, #tpu.memory_space<vmem>>, vector<16x32xf32>
      %c0_12 = arith.constant 0 : index
      %c0_13 = arith.constant 0 : index
      %13 = vector.load %arg5[%c0_12, %c0_13] : memref<16x32xf32, #tpu.memory_space<vmem>>, vector<16x32xf32>
      tpu.vector_store %arg5[%c0_12, %c0_13], %12 {strides = array<i32>} : memref<16x32xf32, #tpu.memory_space<vmem>>, vector<16x32xf32>,
    } else {
    }
    return
  }
  func.func @transform_0(%arg0: i32, %arg1: i32, %arg2: i32) -> (i32, i32) {
    %c0_i32 = arith.constant 0 : i32
    return %arg0, %arg2 : i32, i32
  }
  func.func @transform_1(%arg0: i32, %arg1: i32, %arg2: i32) -> (i32, i32) {
    %c0_i32 = arith.constant 0 : i32
    return %arg2, %arg1 : i32, i32
  }
  func.func @transform_2(%arg0: i32, %arg1: i32, %arg2: i32) -> (i32, i32) {
    %c0_i32 = arith.constant 0 : i32
    return %arg0, %arg1 : i32, i32
  }
}

</mosaic_0001>

<bundles_post_ra>
// kernel: tpu_custom_call.1
= control target key start
LH: loop header
LB: loop body
LE: loop exit
PB: predicated region body
PF: predicated region fallthrough
CT: control target
= control target key end

     0   :  { %7 = vsyncpa [#allocation4], 0  ;;  %s345_s0 = inlined_call_operand.hbm [shape: f32[16,32], index: 0, kind: input, shape index: {}]   ;;  %s346_s1 = inlined_call_operand.hbm [shape: f32[32,32], index: 1, kind: input, shape index: {}]   ;;  %s347_s2 = inlined_call_operand.hbm [shape: f32[16,32], index: 2, kind: output, shape index: {}]  }
   0x1   :  { %8 = vsyncpa [#allocation7], 0 }
   0x2   :  { %9 = vsyncpa [#allocation5], 0  ;;  %s271_s9 = smov [#allocation3]   ;;  %s199_s13 = scalar_lea.hbm %s345_s0, 256 }
   0x3   :  { %s15_s10 = sshll.u32 %s271_s9, 4  ;;  %p200_p0 = scmp.ne.s32.totalorder %s345_s0, %s199_s13  ;;  %s16_s10 = int_to_ptr.vmem [resolvable:$true] %s15_s10 }
   0x4   :  { %p203_p1 = scmp.lt.u32.totalorder %s199_s13, %s345_s0 }
   0x6   :  { %p205_p2 = pnand %p203_p1, %p200_p0 }
   0x8   :  { %208 = shalt.err (!%p205_p2)
}
   0x9   :  { %s209_s18 = scalar_lea.vmem %s16_s10, 256  ;;  %p214_p4 = scmp.lt.s32.totalorder %s16_s10, %s16_s10 }
   0xa   :  { %p210_p3 = scmp.ne.s32.totalorder %s16_s10, %s209_s18  ;;  %p215_p5 = scmp.lt.s32.totalorder %s209_s18, %s209_s18 }
   0xc   :  { %p216_p6 = por %p215_p5, %p214_p4 }
   0xe   :  { %p217_p7 = pnand %p216_p6, %p210_p3 }
  0x10   :  { %220 = shalt.err (!%p217_p7)
}
  0x11   :  { %s272_s19 = smov 128   ;;  %s273_s20 = smov 8  }
  0x12   :  { %21 = dma.hbm_to_vmem [thread:$0]  %s345_s0, 256, %s16_s10, [#allocation4], %s272_s19, %s272_s19, %s273_s20  }
  0x13   :  { %s274_s23 = smov [#allocation6]   ;;  %s221_s27 = scalar_lea.hbm %s346_s1, 512 }
  0x14   :  { %s27_s24 = sshll.u32 %s274_s23, 4  ;;  %p222_p8 = scmp.ne.s32.totalorder %s346_s1, %s221_s27  ;;  %s28_s24 = int_to_ptr.vmem [resolvable:$true] %s27_s24 }
  0x15   :  { %p225_p9 = scmp.lt.u32.totalorder %s221_s27, %s346_s1 }
  0x17   :  { %p227_p10 = pnand %p225_p9, %p222_p8 }
  0x19   :  { %230 = shalt.err (!%p227_p10)
}
  0x1a   :  { %s231_s4 = scalar_lea.vmem %s28_s24, 512  ;;  %p236_p12 = scmp.lt.s32.totalorder %s28_s24, %s28_s24 }
  0x1b   :  { %p232_p11 = scmp.ne.s32.totalorder %s28_s24, %s231_s4  ;;  %p237_p13 = scmp.lt.s32.totalorder %s231_s4, %s231_s4 }
  0x1d   :  { %p238_p0 = por %p237_p13, %p236_p12 }
  0x1f   :  { %p239_p1 = pnand %p238_p0, %p232_p11 }
  0x21   :  { %242 = shalt.err (!%p239_p1)
}
  0x22   :  { %33 = dma.hbm_to_vmem [thread:$0]  %s346_s1, 512, %s28_s24, [#allocation7], %s272_s19, %s272_s19, %s273_s20  }
  0x23   :  { %265 = dma.done.wait [#allocation4], 256  }
  0x24   :  { %266 = vsyncadd [#allocation4], 4294967040 }
  0x25   :  { %267 = dma.done.wait [#allocation7], 512  }
  0x26   :  { %268 = vsyncadd [#allocation7], 4294966784  ;;  %vm44_vm0 = vcmask 261120   ;;  %v275_v0 = vmov 0.0   ;;  %v51_v1 = vld [vmem:[#allocation6] sm:$0xff]  ;;  %v52_v2 = vld [vmem:[#allocation6 + $0x8] sm:$0xff] }
  0x27   :  { %46 = vst.msk [vmem:[#allocation2 + $0x8] sm:$0xff] %vm44_vm0, %v275_v0  ;;  %45 = vst.msk [vmem:[#allocation2] sm:$0xff] %vm44_vm0, %v275_v0  ;;  %v53_v3 = vld [vmem:[#allocation6 + $0x10] sm:$0xff]  ;;  %v185_v4 = vpack.c.bf16 %v52_v2, %v51_v1  ;;  %v54_v5 = vld [vmem:[#allocation6 + $0x18] sm:$0xff]  ;;  %s276_s1 = smov [#allocation8]  }
  0x28   :  { %v47_v6 = vld [vmem:[#allocation3] sm:$0xff]  ;;  %v189_v7 = vpack.c.bf16 %v54_v5, %v53_v3  ;;  %v48_v8 = vld [vmem:[#allocation3 + $0x8] sm:$0xff]  ;;  %s153_s6 = sshll.u32 %s276_s1, 4  ;;  %s154_s6 = int_to_ptr.vmem [resolvable:$true] %s153_s6 }
  0x29   :  { %182 = vmatprep.mubr.msk.f32.mxu0 %vm44_vm0, %v47_v6  ;;  %186 = vmatprep.subr.bf16.mxu0 %v185_v4  ;;  %s243_s7 = scalar_lea.vmem %s154_s6, 256  ;;  %p248_p3 = scmp.lt.s32.totalorder %s154_s6, %s154_s6 }
  0x2a   :  { %188 = vmatpush3.bf16.msra.mxu0 %v185_v4  ;;  %p244_p2 = scmp.ne.s32.totalorder %s154_s6, %s243_s7  ;;  %p249_p4 = scmp.lt.s32.totalorder %s243_s7, %s243_s7 }
  0x2b   :  { %190 = vmatprep.subr.bf16.mxu0 %v189_v7 }
  0x2c   :  { %p250_p5 = por %p249_p4, %p248_p3 }
  0x2e   :  { %192 = vmatpush3.bf16.msra.mxu0 %v189_v7  ;;  %v50_v9 = vld [vmem:[#allocation2 + $0x8] sm:$0xff]  ;;  %v49_v10 = vld [vmem:[#allocation2] sm:$0xff]  ;;  %p251_p6 = pnand %p250_p5, %p244_p2 }
  0x31   :  { %183 = vmatmul.mubr.msk.f32.vlgmr.msra.gmra.mrb[0].mxu0 %vm44_vm0, %v48_v8 }
 0x104   :  { %v184_v11 = vpop.f32.mrb[0].mxu0 }
 0x105   :  { %v138_v12 = vadd.f32 %v184_v11, %v50_v9  ;;  %v128_v13 = vpop.f32.mrb[1].mxu0 }
 0x106   :  { %v137_v14 = vadd.f32 %v128_v13, %v49_v10 }
 0x107   :  { %140 = vst.msk [vmem:[#allocation2 + $0x8] sm:$0xff] %vm44_vm0, %v138_v12 }
 0x108   :  { %139 = vst.msk [vmem:[#allocation2] sm:$0xff] %vm44_vm0, %v137_v14 }
 0x10e   :  { %v145_v15 = vld [vmem:[#allocation2 + $0x8] sm:$0xff] }
 0x10f   :  { %v144_v16 = vld [vmem:[#allocation2] sm:$0xff]  ;;  %147 = vst.msk [vmem:[#allocation8 + $0x8] sm:$0xff] %vm44_vm0, %v145_v15 }
 0x110   :  { %146 = vst.msk [vmem:[#allocation8] sm:$0xff] %vm44_vm0, %v144_v16 }
 0x111   :  { %254 = shalt.err (!%p251_p6)
}
 0x112   :  { %s255_s10 = scalar_lea.hbm %s347_s2, 256 }
 0x113   :  { %p256_p7 = scmp.ne.s32.totalorder %s347_s2, %s255_s10  ;;  %p259_p8 = scmp.lt.u32.totalorder %s255_s10, %s347_s2 }
 0x115   :  { %p261_p9 = pnand %p259_p8, %p256_p7 }
 0x117   :  { %264 = shalt.err (!%p261_p9)
}
 0x118   :  { %159 = dma.vmem_to_hbm [thread:$0]  %s154_s6, 256, %s347_s2, [#allocation5], %s272_s19, %s272_s19, %s273_s20  }
 0x119   :  { %269 = dma.done.wait [#allocation5], 256  }
 0x11a   :  { %270 = vsyncadd [#allocation5], 4294967040 }
 0x11b   :  { %163 = vsyncpa [#allocation4], 1 }
 0x11c   :  { %164 = vsyncpa [#allocation7], 1 }
 0x11d   :  { %165 = vsyncpa [#allocation5], 1 }

</bundles_post_ra>
